<compile_context>
chip_gen: v6e
topology: v6e:2x2x1
jax: 0.10.0
libtpu: 0.0.40
codegen_flags: <defaults>
</compile_context>

<pallas_src>
import functools

import jax
import jax.numpy as jnp
from jax.experimental import pallas as pl
from jax.experimental.pallas import tpu as pltpu

EPS_LN = 1e-5
MASK_NEG = -1e30
VMEM_LIMIT = 32 * 1024 * 1024


# --------------------------- adaLN modulation ------------------------------ #

def _adaln_kernel(c_ref, w1_ref, b1_ref, w2_ref, b2_ref, o_ref):
    c = c_ref[...].astype(jnp.bfloat16)
    h = jnp.dot(c, w1_ref[...], preferred_element_type=jnp.float32) + b1_ref[...]
    h = h * jax.nn.sigmoid(h)                               # SiLU (f32)
    z = jnp.dot(h.astype(jnp.bfloat16), w2_ref[...],
                preferred_element_type=jnp.float32) + b2_ref[...]
    o_ref[...] = z / (1.0 + jnp.abs(z))                     # Softsign


def adaln_modulation(c, w1_bf, b1, w2_bf, b2):
    b, h = c.shape
    vmem = pl.BlockSpec(memory_space=pltpu.MemorySpace.VMEM)
    return pl.pallas_call(
        _adaln_kernel,
        out_shape=jax.ShapeDtypeStruct((b, 6 * h), jnp.float32),
        in_specs=[vmem] * 5,
        out_specs=vmem,
        compiler_params=pltpu.CompilerParams(vmem_limit_bytes=VMEM_LIMIT),
    )(c, w1_bf, b1.reshape(1, -1), w2_bf, b2.reshape(1, -1))


# ------------------ fused attention branch (per batch element) ------------- #

def _attn_branch_kernel(x_ref, wqkv_ref, qnw_ref, qnb_ref, knw_ref, knb_ref,
                        wproj_ref, bproj_ref, shift_ref, scale_ref, gate_ref,
                        mask_ref, o_ref, *, num_heads, head_dim):
    # TODO(synk): for large N add a query-tile grid axis with online (flash)
    # softmax so the (N, N) score matrix never exceeds one VMEM tile.
    x = x_ref[0]                                            # (N, H) f32
    H = num_heads * head_dim
    Dh = head_dim
    sm_scale = Dh ** -0.5

    # fused qkv projection (no bias): bf16 MXU operands, f32 accumulation
    qkv = jnp.dot(x.astype(jnp.bfloat16), wqkv_ref[...],
                  preferred_element_type=jnp.float32)       # (N, 3H)

    mask = mask_ref[0]                                      # (1, N) 1.0/0.0
    bias = (1.0 - mask) * MASK_NEG                          # (1, N) f32

    qn_w = qnw_ref[...]
    qn_b = qnb_ref[...]
    kn_w = knw_ref[...]
    kn_b = knb_ref[...]

    def _ln_affine(t, w, b):                                # per-head qk-norm
        mu = jnp.mean(t, axis=-1, keepdims=True)
        var = jnp.mean(jnp.square(t - mu), axis=-1, keepdims=True)
        return (t - mu) * jax.lax.rsqrt(var + EPS_LN) * w + b

    head_outs = []
    for h in range(num_heads):                              # static unroll
        q = qkv[:, h * Dh:(h + 1) * Dh]
        k = qkv[:, H + h * Dh:H + (h + 1) * Dh]
        v = qkv[:, 2 * H + h * Dh:2 * H + (h + 1) * Dh]

        qn = _ln_affine(q, qn_w, qn_b) * sm_scale           # fold 1/sqrt(Dh)
        kn = _ln_affine(k, kn_w, kn_b)

        s = jnp.dot(qn.astype(jnp.bfloat16), kn.T.astype(jnp.bfloat16),
                    preferred_element_type=jnp.float32)     # (N, N) f32
        s = s + bias                                        # mask invalid keys
        m = jnp.max(s, axis=-1, keepdims=True)
        p = jnp.exp(s - m)
        denom = jnp.sum(p, axis=-1, keepdims=True)
        o_h = jnp.dot(p.astype(jnp.bfloat16), v.astype(jnp.bfloat16),
                      preferred_element_type=jnp.float32) / denom
        head_outs.append(o_h)

    attn = jnp.concatenate(head_outs, axis=-1)              # (N, H) lane-dense

    proj = jnp.dot(attn.astype(jnp.bfloat16), wproj_ref[...],
                   preferred_element_type=jnp.float32) + bproj_ref[...]

    # LayerNorm (no affine), f32 statistics
    mu = jnp.mean(proj, axis=-1, keepdims=True)
    var = jnp.mean(jnp.square(proj - mu), axis=-1, keepdims=True)
    pn = (proj - mu) * jax.lax.rsqrt(var + EPS_LN)

    mod = pn * (1.0 + scale_ref[0]) + shift_ref[0]          # (N, H)
    o_ref[0] = x + gate_ref[0] * mod


def attention_branch(x, node_mask_f, params, wqkv_bf, wproj_bf,
                     shift, scale, gate):
    B, N, H = x.shape
    nH = params["num_heads"]
    Dh = H // nH
    kernel = functools.partial(_attn_branch_kernel, num_heads=nH, head_dim=Dh)

    x_spec = pl.BlockSpec((1, N, H), lambda b: (b, 0, 0))
    mod_spec = pl.BlockSpec((1, 1, H), lambda b: (b, 0, 0))
    mask_spec = pl.BlockSpec((1, 1, N), lambda b: (b, 0, 0))
    wqkv_spec = pl.BlockSpec((H, 3 * H), lambda b: (0, 0))
    vec_dh_spec = pl.BlockSpec((1, Dh), lambda b: (0, 0))
    wproj_spec = pl.BlockSpec((H, H), lambda b: (0, 0))
    bproj_spec = pl.BlockSpec((1, H), lambda b: (0, 0))

    return pl.pallas_call(
        kernel,
        out_shape=jax.ShapeDtypeStruct((B, N, H), jnp.float32),
        grid=(B,),
        in_specs=[x_spec, wqkv_spec,
                  vec_dh_spec, vec_dh_spec, vec_dh_spec, vec_dh_spec,
                  wproj_spec, bproj_spec,
                  mod_spec, mod_spec, mod_spec, mask_spec],
        out_specs=x_spec,
        compiler_params=pltpu.CompilerParams(
            dimension_semantics=("parallel",),
            vmem_limit_bytes=VMEM_LIMIT),
    )(x, wqkv_bf,
      params["qn_w"], params["qn_b"], params["kn_w"], params["kn_b"],
      wproj_bf, params["b_proj"].reshape(1, H),
      shift, scale, gate, node_mask_f)


# ----------------- fused MLP + LayerNorm + modulate + residual ------------- #

def _mlp_branch_kernel(x_ref, w1_ref, b1_ref, w2_ref, b2_ref,
                       shift_ref, scale_ref, gate_ref, o_ref):
    x = x_ref[0]                                            # (tn, H) f32
    h = jnp.dot(x.astype(jnp.bfloat16), w1_ref[...],
                preferred_element_type=jnp.float32) + b1_ref[...]
    h = jax.nn.gelu(h, approximate=False)                   # exact GELU (f32)
    y = jnp.dot(h.astype(jnp.bfloat16), w2_ref[...],
                preferred_element_type=jnp.float32) + b2_ref[...]

    mu = jnp.mean(y, axis=-1, keepdims=True)
    var = jnp.mean(jnp.square(y - mu), axis=-1, keepdims=True)
    yn = (y - mu) * jax.lax.rsqrt(var + EPS_LN)             # LN, no affine

    mod = yn * (1.0 + scale_ref[0]) + shift_ref[0]
    o_ref[0] = x + gate_ref[0] * mod


def _pick_row_tile(n):
    for t in (512, 256, 128):
        if n % t == 0:
            return t
    return n


def mlp_branch(x, params, fc1_bf, fc2_bf, shift, scale, gate):
    B, N, H = x.shape
    Hm = fc1_bf.shape[1]
    # Row-tile the node axis (keeps the (tn, Hm) GELU intermediate VMEM-sized
    # on 64 MiB v7x while still pipelining for larger N).
    tn = _pick_row_tile(N)

    x_spec = pl.BlockSpec((1, tn, H), lambda b, n: (b, n, 0))
    mod_spec = pl.BlockSpec((1, 1, H), lambda b, n: (b, 0, 0))

    return pl.pallas_call(
        _mlp_branch_kernel,
        out_shape=jax.ShapeDtypeStruct((B, N, H), jnp.float32),
        grid=(B, N // tn),
        in_specs=[x_spec,
                  pl.BlockSpec((H, Hm), lambda b, n: (0, 0)),
                  pl.BlockSpec((1, Hm), lambda b, n: (0, 0)),
                  pl.BlockSpec((Hm, H), lambda b, n: (0, 0)),
                  pl.BlockSpec((1, H), lambda b, n: (0, 0)),
                  mod_spec, mod_spec, mod_spec],
        out_specs=x_spec,
        compiler_params=pltpu.CompilerParams(
            dimension_semantics=("parallel", "parallel"),
            vmem_limit_bytes=VMEM_LIMIT),
    )(x, fc1_bf, params["fc1_b"].reshape(1, Hm),
      fc2_bf, params["fc2_b"].reshape(1, H),
      shift, scale, gate)


# --------------------------- Block forward (Pallas) ------------------------ #

def block_forward(params, x, c, node_mask):
    B, N, H = x.shape

    # One-time bf16 weight casts (done by XLA outside the kernels; halves the
    # per-grid-step weight DMA volume and removes in-kernel casts).
    bf = jnp.bfloat16
    ada_w1 = params["ada_w1"].astype(bf)
    ada_w2 = params["ada_w2"].astype(bf)
    wqkv = params["w_qkv"].astype(bf)
    wproj = params["w_proj"].astype(bf)
    fc1_w = params["fc1_w"].astype(bf)
    fc2_w = params["fc2_w"].astype(bf)

    mods = adaln_modulation(c, ada_w1, params["ada_b1"], ada_w2, params["ada_b2"])
    (shift_msa, scale_msa, gate_msa,
     shift_mlp, scale_mlp, gate_mlp) = [
        m.reshape(B, 1, H) for m in jnp.split(mods, 6, axis=1)]

    mask_f = node_mask.astype(jnp.float32).reshape(B, 1, N)

    x = attention_branch(x, mask_f, params, wqkv, wproj,
                         shift_msa, scale_msa, gate_msa)
    x = mlp_branch(x, params, fc1_w, fc2_w, shift_mlp, scale_mlp, gate_mlp)
    return x


# --------------------------- pure-JAX reference ---------------------------- #

def block_forward_ref(params, x, c, node_mask):
    B, N, H = x.shape
    nH = params["num_heads"]
    Dh = H // nH

    def ln(t, axis=-1):
        mu = jnp.mean(t, axis=axis, keepdims=True)
        var = jnp.mean((t - mu) ** 2, axis=axis, keepdims=True)
        return (t - mu) * jax.lax.rsqrt(var + EPS_LN)

    h = c @ params["ada_w1"] + params["ada_b1"]
    h = h * jax.nn.sigmoid(h)
    z = h @ params["ada_w2"] + params["ada_b2"]
    mods = z / (1.0 + jnp.abs(z))
    (shift_msa, scale_msa, gate_msa,
     shift_mlp, scale_mlp, gate_mlp) = jnp.split(mods, 6, axis=1)

    qkv = (x.reshape(B * N, H) @ params["w_qkv"]).reshape(B, N, 3, nH, Dh)
    qkv = qkv.transpose(2, 0, 3, 1, 4)
    q, k, v = qkv[0], qkv[1], qkv[2]
    qn = ln(q) * params["qn_w"] + params["qn_b"]
    kn = ln(k) * params["kn_w"] + params["kn_b"]
    s = jnp.einsum("bhqd,bhkd->bhqk", qn, kn) * (Dh ** -0.5)
    s = s + jnp.where(node_mask, 0.0, MASK_NEG)[:, None, None, :]
    p = jax.nn.softmax(s, axis=-1)
    attn = jnp.einsum("bhqk,bhkd->bhqd", p, v)
    attn = attn.transpose(0, 2, 1, 3).reshape(B * N, H)
    attn = (attn @ params["w_proj"] + params["b_proj"]).reshape(B, N, H)

    x = x + gate_msa[:, None, :] * (ln(attn) * (1 + scale_msa[:, None, :])
                                    + shift_msa[:, None, :])

    hm = x.reshape(B * N, H) @ params["fc1_w"] + params["fc1_b"]
    hm = jax.nn.gelu(hm, approximate=False)
    mlp_out = (hm @ params["fc2_w"] + params["fc2_b"]).reshape(B, N, H)

    x = x + gate_mlp[:, None, :] * (ln(mlp_out) * (1 + scale_mlp[:, None, :])
                                    + shift_mlp[:, None, :])
    return x


# ---------------------------------- main ----------------------------------- #

if __name__ == "__main__":
    B, N, H = 2, 8, 32
    num_heads = 4
    Dh = H // num_heads
    mlp_hidden = int(H * 4.0)

    key = jax.random.PRNGKey(0)
    ks = jax.random.split(key, 16)

    def rnd(k, shape, scale=0.05):
        return jax.random.normal(k, shape, jnp.float32) * scale

    params = {
        "num_heads": num_heads,
        # adaLN modulation MLP
        "ada_w1": rnd(ks[0], (H, H)),
        "ada_b1": rnd(ks[1], (H,)),
        "ada_w2": rnd(ks[2], (H, 6 * H)),
        "ada_b2": rnd(ks[3], (6 * H,)),
        # attention (qkv_bias=False, qk_norm=True)
        "w_qkv": rnd(ks[4], (H, 3 * H)),
        "qn_w": (1.0 + rnd(ks[5], (1, Dh), 0.1)),
        "qn_b": rnd(ks[6], (1, Dh), 0.1),
        "kn_w": (1.0 + rnd(ks[7], (1, Dh), 0.1)),
        "kn_b": rnd(ks[8], (1, Dh), 0.1),
        "w_proj": rnd(ks[9], (H, H)),
        "b_proj": rnd(ks[10], (H,)),
        # MLP
        "fc1_w": rnd(ks[11], (H, mlp_hidden)),
        "fc1_b": rnd(ks[12], (mlp_hidden,)),
        "fc2_w": rnd(ks[13], (mlp_hidden, H)),
        "fc2_b": rnd(ks[14], (H,)),
    }

    dk = jax.random.split(ks[15], 3)
    x = jax.random.normal(dk[0], (B, N, H), jnp.float32)
    c = jax.random.normal(dk[1], (B, H), jnp.float32)
    lengths = jnp.array([N, N - 3])                        # ragged node counts
    node_mask = jnp.arange(N)[None, :] < lengths[:, None]  # (B, N) bool

    out = jax.block_until_ready(block_forward(params, x, c, node_mask))
    ref = jax.block_until_ready(block_forward_ref(params, x, c, node_mask))

    assert out.shape == (B, N, H)
    assert bool(jnp.all(jnp.isfinite(out)))
    # bf16 MXU operands vs. pure-f32 reference -> modest tolerance
    assert bool(jnp.allclose(out, ref, atol=1e-2, rtol=1e-2)), (
        float(jnp.max(jnp.abs(out - ref))))
    print("KERNEL_OK")
</pallas_src>

<mosaic_0001>
module attributes {stable_mosaic.version = 11 : i64} {
  func.func @_adaln_kernel(%arg0: memref<2x32xf32, #tpu.memory_space<vmem>>, %arg1: memref<32x32xbf16, #tpu.memory_space<vmem>>, %arg2: memref<1x32xf32, #tpu.memory_space<vmem>>, %arg3: memref<32x192xbf16, #tpu.memory_space<vmem>>, %arg4: memref<1x192xf32, #tpu.memory_space<vmem>>, %arg5: memref<2x192xf32, #tpu.memory_space<vmem>>) attributes {dimension_semantics = [], scalar_prefetch = 0 : i64, scratch_operands = 0 : i64, tpu.core_type = #tpu.core_type<tc>} {
    %c0 = arith.constant 0 : index
    %c0_0 = arith.constant 0 : index
    %0 = vector.load %arg0[%c0, %c0_0] : memref<2x32xf32, #tpu.memory_space<vmem>>, vector<2x32xf32>
    %1 = arith.truncf %0 : vector<2x32xf32> to vector<2x32xbf16>
    %c0_1 = arith.constant 0 : index
    %c0_2 = arith.constant 0 : index
    %2 = vector.load %arg1[%c0_1, %c0_2] : memref<32x32xbf16, #tpu.memory_space<vmem>>, vector<32x32xbf16>
    %cst = arith.constant dense<0.000000e+00> : vector<2x32xf32>
    %3 = tpu.matmul %1, %2, %cst {dimension_numbers = #tpu.dot_dimension_numbers<[1], [0], [0], [1], [0, 0, 1, 1], [], []>} : vector<2x32xbf16>, vector<32x32xbf16>, vector<2x32xf32> -> vector<2x32xf32>
    %c0_3 = arith.constant 0 : index
    %c0_4 = arith.constant 0 : index
    %4 = vector.load %arg2[%c0_3, %c0_4] : memref<1x32xf32, #tpu.memory_space<vmem>>, vector<1x32xf32>
    %5 = vector.broadcast %4 : vector<1x32xf32> to vector<2x32xf32>
    %6 = arith.addf %3, %5 : vector<2x32xf32>
    %7 = arith.negf %6 : vector<2x32xf32>
    %8 = math.exp %7 : vector<2x32xf32>
    %cst_5 = arith.constant 1.000000e+00 : f32
    %9 = vector.broadcast %cst_5 : f32 to vector<2x32xf32>
    %10 = arith.addf %9, %8 : vector<2x32xf32>
    %11 = arith.divf %9, %10 : vector<2x32xf32>
    %12 = arith.mulf %6, %11 : vector<2x32xf32>
    %13 = arith.truncf %12 : vector<2x32xf32> to vector<2x32xbf16>
    %c0_6 = arith.constant 0 : index
    %c0_7 = arith.constant 0 : index
    %14 = vector.load %arg3[%c0_6, %c0_7] : memref<32x192xbf16, #tpu.memory_space<vmem>>, vector<32x192xbf16>
    %cst_8 = arith.constant dense<0.000000e+00> : vector<2x192xf32>
    %15 = tpu.matmul %13, %14, %cst_8 {dimension_numbers = #tpu.dot_dimension_numbers<[1], [0], [0], [1], [0, 0, 1, 1], [], []>} : vector<2x32xbf16>, vector<32x192xbf16>, vector<2x192xf32> -> vector<2x192xf32>
    %c0_9 = arith.constant 0 : index
    %c0_10 = arith.constant 0 : index
    %16 = vector.load %arg4[%c0_9, %c0_10] : memref<1x192xf32, #tpu.memory_space<vmem>>, vector<1x192xf32>
    %17 = vector.broadcast %16 : vector<1x192xf32> to vector<2x192xf32>
    %18 = arith.addf %15, %17 : vector<2x192xf32>
    %19 = math.absf %18 : vector<2x192xf32>
    %cst_11 = arith.constant 1.000000e+00 : f32
    %20 = vector.broadcast %cst_11 : f32 to vector<2x192xf32>
    %21 = arith.addf %20, %19 : vector<2x192xf32>
    %22 = arith.divf %18, %21 : vector<2x192xf32>
    %c0_12 = arith.constant 0 : index
    %c0_13 = arith.constant 0 : index
    %23 = vector.load %arg5[%c0_12, %c0_13] : memref<2x192xf32, #tpu.memory_space<vmem>>, vector<2x192xf32>
    tpu.vector_store %arg5[%c0_12, %c0_13], %22 {strides = array<i32>} : memref<2x192xf32, #tpu.memory_space<vmem>>, vector<2x192xf32>,
    return
  }
}

</mosaic_0001>

<bundles_post_ra>
// kernel: tpu_custom_call.1
= control target key start
LH: loop header
LB: loop body
LE: loop exit
PB: predicated region body
PF: predicated region fallthrough
CT: control target
= control target key end

     0   :  { %10 = vsyncpa [#allocation3], 0  ;;  %s454_s0 = inlined_call_operand.hbm [shape: f32[2,32], index: 0, kind: input, shape index: {}]   ;;  %s455_s1 = inlined_call_operand.hbm [shape: bf16[32,32], index: 1, kind: input, shape index: {}]   ;;  %s456_s2 = inlined_call_operand.vmem [shape: f32[1,32], index: 2, kind: input, shape index: {}]   ;;  %s457_s3 = inlined_call_operand.hbm [shape: bf16[32,192], index: 3, kind: input, shape index: {}]   ;;  %s458_s4 = inlined_call_operand.vmem [shape: f32[1,192], index: 4, kind: input, shape index: {}]   ;;  %s459_s5 = inlined_call_operand.hbm [shape: f32[2,192], index: 5, kind: output, shape index: {}]  }
   0x1   :  { %11 = vsyncpa [#allocation6], 0 }
   0x2   :  { %12 = vsyncpa [#allocation4], 0  ;;  %s392_s18 = smov [#allocation5]  }
   0x3   :  { %s28_s19 = sshll.u32 %s392_s18, 4  ;;  %s29_s19 = int_to_ptr.vmem [resolvable:$true] %s28_s19 }
   0x4   :  { %s314_s20 = scalar_lea.vmem %s29_s19, 256  ;;  %p319_p1 = scmp.lt.s32.totalorder %s29_s19, %s29_s19 }
   0x5   :  { %p315_p0 = scmp.ne.s32.totalorder %s29_s19, %s314_s20  ;;  %p320_p2 = scmp.lt.s32.totalorder %s314_s20, %s314_s20 }
   0x7   :  { %p321_p3 = por %p320_p2, %p319_p1 }
   0x9   :  { %p322_p4 = pnand %p321_p3, %p315_p0 }
   0xb   :  { %325 = shalt.err (!%p322_p4)
}
   0xc   :  { %s393_s21 = smov 64   ;;  %s394_s22 = smov 4  }
   0xd   :  { %34 = dma.hbm_to_vmem [thread:$0]  %s455_s1, 256, %s29_s19, [#allocation6], %s393_s21, %s393_s21, %s394_s22  }
   0xe   :  { %s395_s25 = smov [#allocation2]   ;;  %s396_s27 = smov [#allocation7]  }
   0xf   :  { %s19_s26 = sshll.u32 %s395_s25, 4  ;;  %s42_s28 = sshll.u32 %s396_s27, 4  ;;  %s20_s26 = int_to_ptr.vmem [resolvable:$true] %s19_s26  ;;  %s43_s28 = int_to_ptr.vmem [resolvable:$true] %s42_s28 }
  0x10   :  { %s334_s29 = scalar_lea.vmem %s20_s26, 32  ;;  %p339_p6 = scmp.lt.s32.totalorder %s20_s26, %s20_s26 }
  0x11   :  { %p335_p5 = scmp.ne.s32.totalorder %s20_s26, %s334_s29  ;;  %p340_p7 = scmp.lt.s32.totalorder %s334_s29, %s334_s29 }
  0x13   :  { %p341_p8 = por %p340_p7, %p339_p6 }
  0x15   :  { %p342_p9 = pnand %p341_p8, %p335_p5 }
  0x17   :  { %345 = shalt.err (!%p342_p9)
}
  0x18   :  { %22 = dma.hbm_to_vmem [thread:$0]  %s454_s0, 32, %s20_s26, [#allocation3]  }
  0x19   :  { %s354_s7 = scalar_lea.vmem %s43_s28, 512  ;;  %p359_p11 = scmp.lt.s32.totalorder %s43_s28, %s43_s28 }
  0x1a   :  { %p355_p10 = scmp.ne.s32.totalorder %s43_s28, %s354_s7  ;;  %p360_p12 = scmp.lt.s32.totalorder %s354_s7, %s354_s7 }
  0x1c   :  { %p361_p13 = por %p360_p12, %p359_p11 }
  0x1e   :  { %p362_p0 = pnand %p361_p13, %p355_p10 }
  0x20   :  { %365 = shalt.err (!%p362_p0)
}
  0x21   :  { %s397_s1 = smov 128   ;;  %s398_s8 = smov 8  }
  0x22   :  { %48 = dma.hbm_to_vmem [thread:$0]  %s457_s3, 512, %s43_s28, [#allocation6], %s397_s1, %s397_s1, %s398_s8  }
  0x23   :  { %386 = dma.done.wait [#allocation3], 32  }
  0x24   :  { %387 = vsyncadd [#allocation3], 4294967264 }
  0x25   :  { %388 = dma.done.wait [#allocation6], 768  }
  0x26   :  { %389 = vsyncadd [#allocation6], 4294966528  ;;  %v399_v0 = vmov 0.0   ;;  %vm400_vm0 = vmmov 0   ;;  %v290_v1 = vld [vmem:[#allocation5 + $0x8] sm:$0xff]   ;;  %v291_v2 = vld [vmem:[#allocation5] sm:$0xff]   ;;  %v144_v22 = vlaneseq }
  0x27   :  { %270 = vmatprep.subr.bf16.mxu0 %v399_v0  ;;  %274 = vmatprep.mubr.msk.bf16.mxu0 %vm400_vm0, %v399_v0  ;;  %v61_v3 = vld [vmem:[#allocation2] sm:$0x3]  ;;  %vm86_vm1 = vcmask 261120   ;;  %v292_v5 = vld [vmem:[#allocation7 + $0x14] ss:$8 sps:$4 sm:$0xff]   ;;  %v401_v9 = vmov 0  }
  0x28   :  { %271 = vmatpush3.bf16.msra.mxu0 %v290_v1  ;;  %v62_v4 = vpack.c.bf16 %v61_v3, %v61_v3  ;;  %v294_v6 = vld [vmem:[#allocation7 + $0x10] ss:$8 sps:$4 sm:$0xff]   ;;  %189 = vmatprep.subr.bf16.mxu1 %v292_v5  ;;  %v295_v7 = vld [vmem:[#allocation7 + $0x4] ss:$8 sps:$4 sm:$0xff]   ;;  %v297_v8 = vld [vmem:[#allocation7] ss:$8 sps:$4 sm:$0xff]  }
  0x29   :  { %272 = vmatprep.subr.bf16.mxu0 %v399_v0  ;;  %190 = vmatpush1.bf16.msra.mxu1 %v294_v6  ;;  %v257_v10 = vld [vmem:[%s456_s2] ss:$0 sm:$0xff]  ;;  %v145_v23 = vshrl.u32 %v144_v22, 7  ;;  %v402_v39 = vmov 1983009808   ;;  %vm237_vm2 = vcmask 1041408  }
  0x2a   :  { %191 = vmatprep.subr.bf16.mxu1 %v295_v7  ;;  %209 = vmatprep.mubr.bf16.mxu1 %v401_v9  ;;  %v142_v25 = vld [vmem:[%s458_s4] sm:$0x3]  ;;  %v230_v40 = vunpack.c.l.s4 %v402_v39  ;;  %vm238_vm3 = vcmask 519170   ;;  %s403_s4 = smov [#allocation8]  }
  0x2b   :  { %v146_v24 = vsub.s32 0, %v145_v23  ;;  %v150_v26 = vsub.s32 1, %v145_v23  ;;  %s247_s12 = sshll.u32 %s403_s4, 4  ;;  %vm239_vm4 = vmor %vm238_vm3, %vm237_vm2  ;;  %s248_s12 = int_to_ptr.vmem [resolvable:$true] %s247_s12 }
  0x2c   :  { %273 = vmatpush3.bf16.msra.mxu0 %v291_v2  ;;  %v231_v41 = vunpack.c.0.s8 %v230_v40  ;;  %s366_s13 = scalar_lea.vmem %s248_s12, 64  ;;  %p371_p2 = scmp.lt.s32.totalorder %s248_s12, %s248_s12 }
  0x2d   :  { %192 = vmatpush1.bf16.msra.mxu1 %v297_v8  ;;  %v147_v27 = vrot.slane %v142_v25, %v146_v24  ;;  %v151_v28 = vrot.slane %v142_v25, %v150_v26  ;;  %p367_p1 = scmp.ne.s32.totalorder %s248_s12, %s366_s13  ;;  %p372_p3 = scmp.lt.s32.totalorder %s366_s13, %s366_s13 }
  0x2e   :  { %v234_v44 = vsub.s32 %v231_v41, %v145_v23 }
  0x2f   :  { %275 = vmatmul.mubr.msk.bf16.vlgmr.msra.gmra.mxu0 %vm86_vm1, %v62_v4  ;;  %p373_p4 = por %p372_p3, %p371_p2 }
  0x31   :  { %p374_p5 = pnand %p373_p4, %p367_p1 }
  0xef   :  { %v124_v11 = vpop.f32.mrf.mxu0 }
  0xf0   :  { %v125_v12 = vadd.f32 %v257_v10, %v124_v11 }
  0xf1   :  { %v276_v13 = vpop.f32.mrf.mxu0 }
  0xf2   :  { %v261_v14 = vmul.f32 -1.442695, %v125_v12 }
  0xf3   :  { %v127_v15 = vpop.f32.mrf.mxu0 }
  0xf4   :  { %298 = vpow2.f32 %v261_v14 }
  0xf5   :  { %v277_v16 = vpop.f32.mrf.mxu0 }
 0x101   :  { %v299_v17 = vpop.eup %298 }
 0x102   :  { %v133_v18 = vadd.f32 1.0, %v299_v17 }
 0x104   :  { %300 = vrcp.f32 %v133_v18 }
 0x111   :  { %v301_v19 = vpop.eup %300 }
 0x112   :  { %v136_v20 = vmul.f32 %v301_v19, %v125_v12 }
 0x114   :  { %v137_v21 = vpack.c.bf16 %v136_v20, %v136_v20 }
 0x116   :  { %266 = vmatmul.mubr.msk.bf16.vlgmr.msra.gmra.mxu1 %vm86_vm1, %v137_v21 }
 0x1d6   :  { %v211_v29 = vpop.f32.mrf.mxu1 }
 0x1d7   :  { %v212_v30 = vadd.f32 %v211_v29, %v147_v27 }
 0x1d8   :  { %v213_v31 = vpop.f32.mrf.mxu1 }
 0x1d9   :  { %v218_v32 = vand.u32 2147483647, %v212_v30  ;;  %v214_v33 = vadd.f32 %v213_v31, %v151_v28 }
 0x1da   :  { %v215_v34 = vpop.f32.mrf.mxu1 }
 0x1db   :  { %v220_v35 = vadd.f32 1.0, %v218_v32  ;;  %v219_v36 = vand.u32 2147483647, %v214_v33 }
 0x1dc   :  { %v216_v37 = vpop.f32.mrf.mxu1 }
 0x1dd   :  { %302 = vrcp.f32 %v220_v35  ;;  %v221_v38 = vadd.f32 1.0, %v219_v36 }
 0x1df   :  { %304 = vrcp.f32 %v221_v38 }
 0x1ea   :  { %v303_v42 = vpop.eup %302 }
 0x1eb   :  { %v223_v45 = vmul.f32 %v303_v42, %v212_v30 }
 0x1ec   :  { %v305_v43 = vpop.eup %304 }
 0x1ed   :  { %v225_v46 = vmul.f32 %v305_v43, %v214_v33 }
 0x1ef   :  { %v228_v47 = vcombine.low %v223_v45, %v225_v46 }
 0x1f1   :  { %v235_v48 = vrot.slane %v228_v47, %v234_v44 }
 0x1f3   :  { %240 = vst.msk [vmem:[#allocation8] sm:$0xf] %vm239_vm4, %v235_v48 }
 0x1f4   :  { %377 = shalt.err (!%p374_p5)
}
 0x1f5   :  { %250 = dma.vmem_to_hbm [thread:$0]  %s248_s12, 64, %s459_s5, [#allocation4]  }
 0x1f6   :  { %390 = dma.done.wait [#allocation4], 64  }
 0x1f7   :  { %391 = vsyncadd [#allocation4], 4294967232 }
 0x1f8   :  { %254 = vsyncpa [#allocation3], 1 }
 0x1f9   :  { %255 = vsyncpa [#allocation6], 1 }
 0x1fa   :  { %256 = vsyncpa [#allocation4], 1 }

</bundles_post_ra>
